<compile_context>
chip_gen: v7x
topology: tpu7x:2x2x1
jax: 0.10.0
libtpu: 0.0.40
codegen_flags: <defaults>
</compile_context>

<pallas_src>
import functools
import math

import jax
import jax.numpy as jnp
import numpy as np
from jax.experimental import pallas as pl
from jax.experimental.pallas import tpu as pltpu


_VMEM_LIMIT = 32 * 1024 * 1024  # safe on v5e/v6e (128 MiB) and v7x (64 MiB)


def _pick_tile(dim, preferred):
    """Largest power-of-two-ish tile <= preferred that divides dim."""
    if dim <= preferred:
        return dim
    t = preferred
    while t > 1 and dim % t:
        t //= 2
    return t if dim % t == 0 else dim


# ----------------------------- tiled linear ---------------------------------


def _linear_kernel(x_ref, w_ref, b_ref, o_ref, acc_ref, *, compute_dtype):
    @pl.when(pl.program_id(2) == 0)
    def _():
        acc_ref[...] = jnp.zeros_like(acc_ref)

    x = x_ref[...]
    w = w_ref[...]
    if compute_dtype is not None:          # e.g. bf16 operands, f32 accumulate
        x = x.astype(compute_dtype)
        w = w.astype(compute_dtype)
    acc_ref[...] += jnp.dot(x, w, preferred_element_type=jnp.float32)

    @pl.when(pl.program_id(2) == pl.num_programs(2) - 1)
    def _():
        o_ref[...] = (acc_ref[...] + b_ref[...].astype(jnp.float32)).astype(
            o_ref.dtype
        )


def linear(x, w_t, b, *, bm=256, bn=256, bk=512, compute_dtype=None):
    """x: [M, K], w_t: [K, N], b: [N] -> [M, N], tiled + pipelined."""
    M, K = x.shape
    _, N = w_t.shape
    tm = _pick_tile(M, bm)
    tn = _pick_tile(N, bn)
    tk = _pick_tile(K, bk)
    kern = functools.partial(_linear_kernel, compute_dtype=compute_dtype)
    return pl.pallas_call(
        kern,
        out_shape=jax.ShapeDtypeStruct((M, N), x.dtype),
        grid=(M // tm, N // tn, K // tk),
        in_specs=[
            pl.BlockSpec((tm, tk), lambda i, j, k: (i, k)),
            pl.BlockSpec((tk, tn), lambda i, j, k: (k, j)),
            pl.BlockSpec((1, tn), lambda i, j, k: (0, j)),
        ],
        out_specs=pl.BlockSpec((tm, tn), lambda i, j, k: (i, j)),
        scratch_shapes=[pltpu.VMEM((tm, tn), jnp.float32)],
        compiler_params=pltpu.CompilerParams(
            dimension_semantics=("parallel", "parallel", "arbitrary"),
            vmem_limit_bytes=_VMEM_LIMIT,
        ),
    )(x, w_t, b.reshape(1, N))


# ----------------- flash causal attention with fused NeoX RoPE ---------------


def _flash_attn_kernel(q_ref, k_ref, v_ref, csq_ref, csk_ref, o_ref,
                       m_sc, l_sc, acc_sc, *, scale):
    qi = pl.program_id(1)
    ki = pl.program_id(2)
    tq, n_heads, head = q_ref.shape
    tk = k_ref.shape[0]
    q_start = qi * tq
    k_start = ki * tk

    @pl.when(ki == 0)
    def _init():
        m_sc[...] = jnp.full_like(m_sc, -jnp.inf)
        l_sc[...] = jnp.zeros_like(l_sc)
        acc_sc[...] = jnp.zeros_like(acc_sc)

    # kv tiles strictly above the causal diagonal contribute nothing: skip the
    # QK/PV flops entirely (~2x fewer matmul flops for causal prefill).
    @pl.when(k_start <= q_start + tq - 1)
    def _compute():
        d2 = head // 2

        def rope(x, cs):
            # NeoX rotary; cs rows are [cos | sin], broadcast across heads.
            cos = cs[:, None, :d2]
            sin = cs[:, None, d2:]
            x1 = x[..., :d2]
            x2 = x[..., d2:]
            return jnp.concatenate(
                [x1 * cos - x2 * sin, x2 * cos + x1 * sin], axis=-1)

        q = rope(q_ref[...], csq_ref[...]) * scale        # (tq, H, D)
        k = rope(k_ref[...], csk_ref[...])                # (tk, H, D)
        v = v_ref[...]                                    # (tk, H, D)

        qt = jnp.transpose(q, (1, 0, 2))                  # (H, tq, D)
        kt = jnp.transpose(k, (1, 0, 2))                  # (H, tk, D)
        vt = jnp.transpose(v, (1, 0, 2))                  # (H, tk, D)

        # scores: contract head_size of both operands in natural layout
        # (no k.T materialization), batched over heads.
        s = jax.lax.dot_general(
            qt, kt, (((2,), (2,)), ((0,), (0,))),
            preferred_element_type=jnp.float32)           # (H, tq, tk)

        # causal mask from two skinny iotas + per-tile offsets.
        row = q_start + jax.lax.broadcasted_iota(jnp.int32, (tq, 1), 0)
        col = k_start + jax.lax.broadcasted_iota(jnp.int32, (1, tk), 1)
        s = jnp.where((col <= row)[None, :, :], s, -jnp.inf)

        m_prev = m_sc[...]                                # (H, tq, 1)
        m_new = jnp.maximum(m_prev, jnp.max(s, axis=-1, keepdims=True))
        alpha = jnp.exp(m_prev - m_new)
        p = jnp.exp(s - m_new)                            # (H, tq, tk)
        l_sc[...] = alpha * l_sc[...] + jnp.sum(p, axis=-1, keepdims=True)
        pv = jax.lax.dot_general(
            p.astype(vt.dtype), vt, (((2,), (1,)), ((0,), (0,))),
            preferred_element_type=jnp.float32)           # (H, tq, D)
        acc_sc[...] = alpha * acc_sc[...] + pv
        m_sc[...] = m_new

    @pl.when(ki == pl.num_programs(2) - 1)
    def _finalize():
        # deferred normalization: one approx reciprocal per row (EUP slot)
        o = acc_sc[...] * pl.reciprocal(l_sc[...], approx=True)   # (H, tq, D)
        o_ref[...] = jnp.transpose(o, (1, 0, 2)).astype(o_ref.dtype)


def flash_causal_attention(q, k, v, cs, scale, *, block_q=256, block_k=256):
    """q/k/v: [B, S, H, D] (no transposes), cs: [B, S, D] = [cos|sin] rows.

    Returns [B, S, H, D] causal self-attention with NeoX RoPE applied to q/k.
    """
    B, S, H, D = q.shape
    tq = _pick_tile(S, block_q)
    tk = _pick_tile(S, block_k)
    kern = functools.partial(_flash_attn_kernel, scale=scale)
    return pl.pallas_call(
        kern,
        out_shape=jax.ShapeDtypeStruct((B, S, H, D), q.dtype),
        grid=(B, S // tq, S // tk),
        in_specs=[
            pl.BlockSpec((None, tq, H, D), lambda b, qi, ki: (b, qi, 0, 0)),
            pl.BlockSpec((None, tk, H, D), lambda b, qi, ki: (b, ki, 0, 0)),
            pl.BlockSpec((None, tk, H, D), lambda b, qi, ki: (b, ki, 0, 0)),
            pl.BlockSpec((None, tq, D), lambda b, qi, ki: (b, qi, 0)),
            pl.BlockSpec((None, tk, D), lambda b, qi, ki: (b, ki, 0)),
        ],
        out_specs=pl.BlockSpec((None, tq, H, D), lambda b, qi, ki: (b, qi, 0, 0)),
        scratch_shapes=[
            pltpu.VMEM((H, tq, 1), jnp.float32),   # running max m
            pltpu.VMEM((H, tq, 1), jnp.float32),   # running sum l
            pltpu.VMEM((H, tq, D), jnp.float32),   # un-normalized accumulator
        ],
        compiler_params=pltpu.CompilerParams(
            dimension_semantics=("parallel", "parallel", "arbitrary"),
            vmem_limit_bytes=_VMEM_LIMIT,
        ),
    )(q, k, v, cs, cs)


# ------------------------------- module glue --------------------------------


def build_rope_cache(rotary_dim, max_position=2048, base=10000.0):
    inv_freq = 1.0 / (base ** (jnp.arange(0, rotary_dim, 2, dtype=jnp.float32)
                               / rotary_dim))
    t = jnp.arange(max_position, dtype=jnp.float32)
    freqs = jnp.einsum("i,j->ij", t, inv_freq)
    return jnp.concatenate([jnp.cos(freqs), jnp.sin(freqs)], axis=-1)


def attention_with_rope_forward(hidden_states, position_ids, params,
                                compute_dtype=None):
    bsz, seq, hidden = hidden_states.shape
    num_heads = params["num_query_heads"]
    head_size = hidden // num_heads
    T = bsz * seq

    # qkv projection (tiled, pipelined)
    x = hidden_states.reshape(T, hidden)
    qkv = linear(x, params["qkv_w_t"], params["qkv_b"],
                 compute_dtype=compute_dtype)             # [T, 3*hidden]
    q, k, v = jnp.split(qkv, 3, axis=-1)                  # each [T, hidden]

    # per-token [cos | sin] rows — NOT duplicated per head
    pos = position_ids.reshape(-1)
    cs = params["cos_sin_cache"][pos].astype(q.dtype).reshape(
        bsz, seq, head_size)                              # [B, S, D]

    scale = params["scale"]
    if scale is None:
        scale = 1.0 / math.sqrt(head_size)

    # [B, S, H, D] views — free reshapes, no HBM transposes
    q4 = q.reshape(bsz, seq, num_heads, head_size)
    k4 = k.reshape(bsz, seq, num_heads, head_size)
    v4 = v.reshape(bsz, seq, num_heads, head_size)

    o = flash_causal_attention(q4, k4, v4, cs, scale)     # [B, S, H, D]

    # output projection
    out = linear(o.reshape(T, hidden), params["out_w_t"], params["out_b"],
                 compute_dtype=compute_dtype)
    return out.reshape(bsz, seq, hidden)


def reference_forward(hidden_states, position_ids, params):
    """Pure-jnp reference of the same math (for a sanity check)."""
    bsz, seq, hidden = hidden_states.shape
    num_heads = params["num_query_heads"]
    head_size = hidden // num_heads
    T = bsz * seq
    x = hidden_states.reshape(T, hidden)
    qkv = x @ params["qkv_w_t"] + params["qkv_b"]
    q, k, v = jnp.split(qkv, 3, axis=-1)

    pos = position_ids.reshape(-1)
    sel = params["cos_sin_cache"][pos]
    cos = sel[:, : head_size // 2][:, None, :]
    sin = sel[:, head_size // 2:][:, None, :]

    def rope(t):
        t = t.reshape(T, num_heads, head_size)
        t1, t2 = t[..., : head_size // 2], t[..., head_size // 2:]
        return jnp.concatenate(
            [t1 * cos - t2 * sin, t2 * cos + t1 * sin], axis=-1
        ).reshape(T, hidden)

    q, k = rope(q), rope(k)
    scale = params["scale"] or 1.0 / math.sqrt(head_size)
    qh = q.reshape(bsz, seq, num_heads, head_size).transpose(0, 2, 1, 3)
    kh = k.reshape(bsz, seq, num_heads, head_size).transpose(0, 2, 1, 3)
    vh = v.reshape(bsz, seq, num_heads, head_size).transpose(0, 2, 1, 3)
    s = jnp.einsum("bhqd,bhkd->bhqk", qh, kh) * scale
    mask = jnp.tril(jnp.ones((seq, seq), dtype=bool))
    s = jnp.where(mask, s, -jnp.inf)
    p = jax.nn.softmax(s, axis=-1)
    o = jnp.einsum("bhqk,bhkd->bhqd", p, vh).transpose(0, 2, 1, 3)
    o = o.reshape(T, hidden)
    return (o @ params["out_w_t"] + params["out_b"]).reshape(bsz, seq, hidden)


# ---------------------------------- main -------------------------------------

if __name__ == "__main__":
    bsz, seq, hidden = 2, 8, 64
    num_heads = 4                     # num_query = num_key = num_value heads
    head_size = hidden // num_heads
    max_position = 128

    key = jax.random.PRNGKey(0)
    k0, k1, k2, k3, k4, _ = jax.random.split(key, 6)

    params = {
        "qkv_w_t": (0.02 * jax.random.normal(k0, (hidden, 3 * hidden))
                    ).astype(jnp.float32),
        "qkv_b": (0.02 * jax.random.normal(k1, (3 * hidden,))
                  ).astype(jnp.float32),
        "out_w_t": (0.02 * jax.random.normal(k2, (hidden, hidden))
                    ).astype(jnp.float32),
        "out_b": (0.02 * jax.random.normal(k3, (hidden,))
                  ).astype(jnp.float32),
        "cos_sin_cache": build_rope_cache(head_size, max_position),
        "num_query_heads": num_heads,
        "scale": None,                # -> 1/sqrt(head_size), xformers default
    }

    hidden_states = jax.random.normal(k4, (bsz, seq, hidden), dtype=jnp.float32)
    position_ids = jnp.broadcast_to(
        jnp.arange(seq, dtype=jnp.int32)[None, :], (bsz, seq)
    )

    out = attention_with_rope_forward(hidden_states, position_ids, params)
    out = jax.block_until_ready(out)

    ref = jax.block_until_ready(
        reference_forward(hidden_states, position_ids, params)
    )
    np.testing.assert_allclose(np.asarray(out), np.asarray(ref),
                               rtol=3e-2, atol=3e-3)
    assert out.shape == (bsz, seq, hidden)
    print("KERNEL_OK")
</pallas_src>

<mosaic_0001>
module attributes {stable_mosaic.version = 11 : i64} {
  func.func @_linear_kernel(%arg0: i32, %arg1: i32, %arg2: i32, %arg3: memref<16x64xf32, #tpu.memory_space<vmem>>, %arg4: memref<64x192xf32, #tpu.memory_space<vmem>>, %arg5: memref<1x192xf32, #tpu.memory_space<vmem>>, %arg6: memref<16x192xf32, #tpu.memory_space<vmem>>, %arg7: memref<16x192xf32, #tpu.memory_space<vmem>>) attributes {dimension_semantics = [#tpu.dimension_semantics<parallel>, #tpu.dimension_semantics<parallel>, #tpu.dimension_semantics<arbitrary>], iteration_bounds = array<i64: 1, 1, 1>, scalar_prefetch = 0 : i64, scratch_operands = 1 : i64, tpu.core_type = #tpu.core_type<tc>, window_params = [{transform_indices = @transform_0, window_bounds = array<i64: 16, 64>}, {transform_indices = @transform_1, window_bounds = array<i64: 64, 192>}, {transform_indices = @transform_2, window_bounds = array<i64: 1, 192>}, {transform_indices = @transform_3, window_bounds = array<i64: 16, 192>}]} {
    %c0_i32 = arith.constant 0 : i32
    %0 = arith.cmpi eq, %arg2, %c0_i32 : i32
    %1 = arith.extui %0 : i1 to i32
    %c0_i32_0 = arith.constant 0 : i32
    %2 = arith.cmpi ne, %1, %c0_i32_0 : i32
    scf.if %2 {
      %cst_10 = arith.constant 0.000000e+00 : f32
      %12 = vector.broadcast %cst_10 : f32 to vector<16x192xf32>
      %c0_11 = arith.constant 0 : index
      %c0_12 = arith.constant 0 : index
      %13 = vector.load %arg7[%c0_11, %c0_12] : memref<16x192xf32, #tpu.memory_space<vmem>>, vector<16x192xf32>
      tpu.vector_store %arg7[%c0_11, %c0_12], %12 {strides = array<i32>} : memref<16x192xf32, #tpu.memory_space<vmem>>, vector<16x192xf32>,
    } else {
    }
    %c0 = arith.constant 0 : index
    %c0_1 = arith.constant 0 : index
    %3 = vector.load %arg3[%c0, %c0_1] : memref<16x64xf32, #tpu.memory_space<vmem>>, vector<16x64xf32>
    %c0_2 = arith.constant 0 : index
    %c0_3 = arith.constant 0 : index
    %4 = vector.load %arg4[%c0_2, %c0_3] : memref<64x192xf32, #tpu.memory_space<vmem>>, vector<64x192xf32>
    %c0_4 = arith.constant 0 : index
    %c0_5 = arith.constant 0 : index
    %5 = vector.load %arg7[%c0_4, %c0_5] : memref<16x192xf32, #tpu.memory_space<vmem>>, vector<16x192xf32>
    %cst = arith.constant dense<0.000000e+00> : vector<16x192xf32>
    %6 = tpu.matmul %3, %4, %cst {dimension_numbers = #tpu.dot_dimension_numbers<[1], [0], [0], [1], [0, 0, 1, 1], [], []>} : vector<16x64xf32>, vector<64x192xf32>, vector<16x192xf32> -> vector<16x192xf32>
    %7 = arith.addf %5, %6 : vector<16x192xf32>
    %c0_6 = arith.constant 0 : index
    %c0_7 = arith.constant 0 : index
    %8 = vector.load %arg7[%c0_6, %c0_7] : memref<16x192xf32, #tpu.memory_space<vmem>>, vector<16x192xf32>
    tpu.vector_store %arg7[%c0_6, %c0_7], %7 {strides = array<i32>} : memref<16x192xf32, #tpu.memory_space<vmem>>, vector<16x192xf32>,
    %c0_i32_8 = arith.constant 0 : i32
    %9 = arith.cmpi eq, %arg2, %c0_i32_8 : i32
    %10 = arith.extui %9 : i1 to i32
    %c0_i32_9 = arith.constant 0 : i32
    %11 = arith.cmpi ne, %10, %c0_i32_9 : i32
    scf.if %11 {
      %c0_10 = arith.constant 0 : index
      %c0_11 = arith.constant 0 : index
      %12 = vector.load %arg7[%c0_10, %c0_11] : memref<16x192xf32, #tpu.memory_space<vmem>>, vector<16x192xf32>
      %c0_12 = arith.constant 0 : index
      %c0_13 = arith.constant 0 : index
      %13 = vector.load %arg5[%c0_12, %c0_13] : memref<1x192xf32, #tpu.memory_space<vmem>>, vector<1x192xf32>
      %14 = vector.broadcast %13 : vector<1x192xf32> to vector<16x192xf32>
      %15 = arith.addf %12, %14 : vector<16x192xf32>
      %c0_14 = arith.constant 0 : index
      %c0_15 = arith.constant 0 : index
      %16 = vector.load %arg6[%c0_14, %c0_15] : memref<16x192xf32, #tpu.memory_space<vmem>>, vector<16x192xf32>
      tpu.vector_store %arg6[%c0_14, %c0_15], %15 {strides = array<i32>} : memref<16x192xf32, #tpu.memory_space<vmem>>, vector<16x192xf32>,
    } else {
    }
    return
  }
  func.func @transform_0(%arg0: i32, %arg1: i32, %arg2: i32) -> (i32, i32) {
    %c0_i32 = arith.constant 0 : i32
    return %arg0, %arg2 : i32, i32
  }
  func.func @transform_1(%arg0: i32, %arg1: i32, %arg2: i32) -> (i32, i32) {
    %c0_i32 = arith.constant 0 : i32
    return %arg2, %arg1 : i32, i32
  }
  func.func @transform_2(%arg0: i32, %arg1: i32, %arg2: i32) -> (i32, i32) {
    %c0_i32 = arith.constant 0 : i32
    %c0_i32_0 = arith.constant 0 : i32
    return %c0_i32, %arg1 : i32, i32
  }
  func.func @transform_3(%arg0: i32, %arg1: i32, %arg2: i32) -> (i32, i32) {
    %c0_i32 = arith.constant 0 : i32
    return %arg0, %arg1 : i32, i32
  }
}

</mosaic_0001>

<bundles_post_ra>
// kernel: tpu_custom_call.1
= control target key start
LH: loop header
LB: loop body
LE: loop exit
PB: predicated region body
PF: predicated region fallthrough
CT: control target
= control target key end

     0   :  { %8 = vsyncpa [#allocation4], 0  ;;  %s398_s0 = inlined_call_operand.hbm [shape: f32[16,64], index: 0, kind: input, shape index: {}]   ;;  %s399_s1 = inlined_call_operand.hbm [shape: f32[64,192], index: 1, kind: input, shape index: {}]   ;;  %s400_s2 = inlined_call_operand.vmem [shape: f32[1,192], index: 2, kind: input, shape index: {}]   ;;  %s401_s3 = inlined_call_operand.hbm [shape: f32[16,192], index: 3, kind: output, shape index: {}]  }
   0x1   :  { %9 = vsyncpa [#allocation7], 0 }
   0x2   :  { %10 = vsyncpa [#allocation5], 0  ;;  %s317_s12 = smov [#allocation3]   ;;  %s245_s16 = scalar_lea.hbm %s398_s0, 256 }
   0x3   :  { %s16_s13 = sshll.u32 %s317_s12, 4  ;;  %p246_p0 = scmp.ne.s32.totalorder %s398_s0, %s245_s16  ;;  %s17_s13 = int_to_ptr.vmem [resolvable:$true] %s16_s13 }
   0x4   :  { %p249_p1 = scmp.lt.u32.totalorder %s245_s16, %s398_s0 }
   0x6   :  { %p251_p2 = pnand %p249_p1, %p246_p0 }
   0x8   :  { %254 = shalt.err (!%p251_p2)
}
   0x9   :  { %s255_s21 = scalar_lea.vmem %s17_s13, 256  ;;  %p260_p4 = scmp.lt.s32.totalorder %s17_s13, %s17_s13 }
   0xa   :  { %p256_p3 = scmp.ne.s32.totalorder %s17_s13, %s255_s21  ;;  %p261_p5 = scmp.lt.s32.totalorder %s255_s21, %s255_s21 }
   0xc   :  { %p262_p6 = por %p261_p5, %p260_p4 }
   0xe   :  { %p263_p7 = pnand %p262_p6, %p256_p3 }
  0x10   :  { %266 = shalt.err (!%p263_p7)
}
  0x11   :  { %s318_s22 = smov 128   ;;  %s319_s23 = smov 8  }
  0x12   :  { %22 = dma.hbm_to_vmem [thread:$0]  %s398_s0, 256, %s17_s13, [#allocation4], %s318_s22, %s318_s22, %s319_s23  }
  0x13   :  { %s320_s26 = smov [#allocation6]   ;;  %s267_s30 = scalar_lea.hbm %s399_s1, 2048 }
  0x14   :  { %s28_s27 = sshll.u32 %s320_s26, 4  ;;  %p268_p8 = scmp.ne.s32.totalorder %s399_s1, %s267_s30  ;;  %s29_s27 = int_to_ptr.vmem [resolvable:$true] %s28_s27 }
  0x15   :  { %p271_p9 = scmp.lt.u32.totalorder %s267_s30, %s399_s1 }
  0x17   :  { %p273_p10 = pnand %p271_p9, %p268_p8 }
  0x19   :  { %276 = shalt.err (!%p273_p10)
}
  0x1a   :  { %s277_s8 = scalar_lea.vmem %s29_s27, 2048  ;;  %p282_p12 = scmp.lt.s32.totalorder %s29_s27, %s29_s27 }
  0x1b   :  { %p278_p11 = scmp.ne.s32.totalorder %s29_s27, %s277_s8  ;;  %p283_p13 = scmp.lt.s32.totalorder %s277_s8, %s277_s8 }
  0x1d   :  { %p284_p0 = por %p283_p13, %p282_p12 }
  0x1f   :  { %p285_p1 = pnand %p284_p0, %p278_p11 }
  0x21   :  { %288 = shalt.err (!%p285_p1)
}
  0x22   :  { %s321_s0 = smov 256   ;;  %s322_s9 = smov 16  }
  0x23   :  { %34 = dma.hbm_to_vmem [thread:$0]  %s399_s1, 2048, %s29_s27, [#allocation7], %s321_s0, %s321_s0, %s322_s9  }
  0x24   :  { %311 = dma.done.wait [#allocation4], 256  }
  0x25   :  { %312 = vsyncadd [#allocation4], 4294967040 }
  0x26   :  { %313 = dma.done.wait [#allocation7], 2048  }
  0x27   :  { %314 = vsyncadd [#allocation7], 4294965248  ;;  %vm48_vm0 = vcmask 523264   ;;  %v323_v0 = vmov 0.0   ;;  %v55_v1 = vld [vmem:[#allocation6 + $0x8] sm:$0xff]  ;;  %v57_v2 = vld [vmem:[#allocation6 + $0x18] sm:$0xff]  ;;  %v175_v27 = vlaneseq }
  0x28   :  { %145 = vmatprep.mubr.f32.mxu0 %v323_v0  ;;  %151 = vmatprep.mubr.f32.mxu1 %v323_v0  ;;  %49 = vst.msk [vmem:[#allocation2 + $0x8] sm:$0xff] %vm48_vm0, %v323_v0  ;;  %51 = vst.msk [vmem:[#allocation2 + $0x18] sm:$0xff] %vm48_vm0, %v323_v0  ;;  %v54_v3 = vld [vmem:[#allocation6] sm:$0xff]  ;;  %v213_v4 = vpack.c.bf16 %v57_v2, %v55_v1  ;;  %v56_v5 = vld [vmem:[#allocation6 + $0x10] sm:$0xff] }
  0x29   :  { %v59_v6 = vld [vmem:[#allocation6 + $0x28] sm:$0xff]  ;;  %v61_v7 = vld [vmem:[#allocation6 + $0x38] sm:$0xff]  ;;  %v215_v8 = vpack.c.bf16 %v56_v5, %v54_v3  ;;  %v58_v10 = vld [vmem:[#allocation6 + $0x20] sm:$0xff]  ;;  %v176_v28 = vshrl.u32 %v175_v27, 7 }
  0x2a   :  { %v217_v9 = vpack.c.bf16 %v61_v7, %v59_v6  ;;  %v60_v11 = vld [vmem:[#allocation6 + $0x30] sm:$0xff]  ;;  %v63_v12 = vld [vmem:[#allocation6 + $0x48] sm:$0xff]  ;;  %214 = vmatprep.subr.bf16.mxu0 %v213_v4  ;;  %229 = vmatprep.subr.bf16.mxu1 %v213_v4  ;;  %v65_v13 = vld [vmem:[#allocation6 + $0x58] sm:$0xff] }
  0x2b   :  { %216 = vmatpush1.bf16.msra.mxu0 %v215_v8  ;;  %233 = vmatpush1.bf16.msra.mxu1 %v215_v8  ;;  %v219_v14 = vpack.c.bf16 %v60_v11, %v58_v10  ;;  %v221_v15 = vpack.c.bf16 %v65_v13, %v63_v12  ;;  %v62_v16 = vld [vmem:[#allocation6 + $0x40] sm:$0xff]  ;;  %v64_v17 = vld [vmem:[#allocation6 + $0x50] sm:$0xff]  ;;  %v67_v18 = vld [vmem:[#allocation6 + $0x68] sm:$0xff]  ;;  %v177_v29 = vsub.s32 0, %v176_v28  ;;  %v181_v42 = vsub.s32 1, %v176_v28 }
  0x2c   :  { %218 = vmatprep.subr.bf16.mxu0 %v217_v9  ;;  %230 = vmatprep.subr.bf16.mxu1 %v217_v9  ;;  %v69_v19 = vld [vmem:[#allocation6 + $0x78] sm:$0xff]  ;;  %v223_v20 = vpack.c.bf16 %v64_v17, %v62_v16  ;;  %v66_v22 = vld [vmem:[#allocation6 + $0x60] sm:$0xff]  ;;  %v68_v23 = vld [vmem:[#allocation6 + $0x70] sm:$0xff] }
  0x2d   :  { %v225_v21 = vpack.c.bf16 %v69_v19, %v67_v18  ;;  %v227_v24 = vpack.c.bf16 %v68_v23, %v66_v22  ;;  %v52_v25 = vld [vmem:[#allocation3] sm:$0xff]  ;;  %v53_v26 = vld [vmem:[#allocation3 + $0x8] sm:$0xff] }
  0x2e   :  { %v173_v30 = vld [vmem:[%s400_s2] sm:$0x3]  ;;  %s324_s2 = smov [#allocation8]  }
  0x2f   :  { %220 = vmatpush1.bf16.msra.mxu0 %v219_v14  ;;  %234 = vmatpush1.bf16.msra.mxu1 %v219_v14  ;;  %v71_v31 = vld [vmem:[#allocation2 + $0x8] sm:$0xff]  ;;  %v73_v32 = vld [vmem:[#allocation2 + $0x18] sm:$0xff]  ;;  %v178_v33 = vrot.slane %v173_v30, %v177_v29  ;;  %v182_v43 = vrot.slane %v173_v30, %v181_v42  ;;  %s198_s13 = sshll.u32 %s324_s2, 4  ;;  %s199_s13 = int_to_ptr.vmem [resolvable:$true] %s198_s13 }
  0x30   :  { %222 = vmatprep.subr.bf16.mxu0 %v221_v15  ;;  %231 = vmatprep.subr.bf16.mxu1 %v221_v15  ;;  %s289_s14 = scalar_lea.vmem %s199_s13, 512  ;;  %p294_p3 = scmp.lt.s32.totalorder %s199_s13, %s199_s13 }
  0x31   :  { %p290_p2 = scmp.ne.s32.totalorder %s199_s13, %s289_s14  ;;  %p295_p4 = scmp.lt.s32.totalorder %s289_s14, %s289_s14 }
  0x33   :  { %224 = vmatpush1.bf16.msra.mxu0 %v223_v20  ;;  %235 = vmatpush1.bf16.msra.mxu1 %v223_v20  ;;  %p296_p5 = por %p295_p4, %p294_p3 }
  0x34   :  { %226 = vmatprep.subr.bf16.mxu0 %v225_v21  ;;  %232 = vmatprep.subr.bf16.mxu1 %v225_v21 }
  0x35   :  { %p297_p6 = pnand %p296_p5, %p290_p2 }
  0x37   :  { %228 = vmatpush1.bf16.msra.mxu0 %v227_v24  ;;  %236 = vmatpush1.bf16.msra.mxu1 %v227_v24 }
  0x3a   :  { %211 = vmatmul.mubr.msk.f32.vlgmr.msra.gmra.mrb[0].mxu0 %vm48_vm0, %v52_v25  ;;  %212 = vmatmul.mubr.msk.f32.vlgmr.msra.gmra.mrb[0].mxu1 %vm48_vm0, %v53_v26 }
 0x10d   :  { %v147_v34 = vpop.f32.mrb[0].mxu0  ;;  %v153_v35 = vpop.f32.mrb[0].mxu1 }
 0x10e   :  { %v149_v36 = vpop.f32.mrb[1].mxu0  ;;  %v155_v37 = vpop.f32.mrb[1].mxu1  ;;  %v185_v40 = vadd.f32 %v178_v33, %v147_v34  ;;  %v187_v41 = vadd.f32 %v178_v33, %v153_v35 }
 0x10f   :  { %v159_v38 = vadd.f32 %v149_v36, %v71_v31  ;;  %v161_v39 = vadd.f32 %v155_v37, %v73_v32 }
 0x110   :  { %189 = vst [vmem:[#allocation8] sm:$0xff] %v185_v40  ;;  %191 = vst [vmem:[#allocation8 + $0x10] sm:$0xff] %v187_v41 }
 0x111   :  { %163 = vst.msk [vmem:[#allocation2 + $0x8] sm:$0xff] %vm48_vm0, %v159_v38  ;;  %165 = vst.msk [vmem:[#allocation2 + $0x18] sm:$0xff] %vm48_vm0, %v161_v39 }
 0x118   :  { %v170_v44 = vld [vmem:[#allocation2 + $0x8] sm:$0xff]  ;;  %v172_v45 = vld [vmem:[#allocation2 + $0x18] sm:$0xff] }
 0x119   :  { %v186_v46 = vadd.f32 %v182_v43, %v170_v44  ;;  %v188_v47 = vadd.f32 %v182_v43, %v172_v45 }
 0x11b   :  { %190 = vst.msk [vmem:[#allocation8 + $0x8] sm:$0xff] %vm48_vm0, %v186_v46  ;;  %192 = vst.msk [vmem:[#allocation8 + $0x18] sm:$0xff] %vm48_vm0, %v188_v47 }
 0x11c   :  { %300 = shalt.err (!%p297_p6)
}
 0x11d   :  { %s301_s17 = scalar_lea.hbm %s401_s3, 512 }
 0x11e   :  { %p302_p7 = scmp.ne.s32.totalorder %s401_s3, %s301_s17  ;;  %p305_p8 = scmp.lt.u32.totalorder %s301_s17, %s401_s3 }
 0x120   :  { %p307_p9 = pnand %p305_p8, %p302_p7 }
 0x122   :  { %310 = shalt.err (!%p307_p9)
}
 0x123   :  { %204 = dma.vmem_to_hbm [thread:$0]  %s199_s13, 512, %s401_s3, [#allocation5], %s321_s0, %s321_s0, %s322_s9  }
 0x124   :  { %315 = dma.done.wait [#allocation5], 512  }
 0x125   :  { %316 = vsyncadd [#allocation5], 4294966784 }
 0x126   :  { %208 = vsyncpa [#allocation4], 1 }
 0x127   :  { %209 = vsyncpa [#allocation7], 1 }
 0x128   :  { %210 = vsyncpa [#allocation5], 1 }

</bundles_post_ra>
